<compile_context>
chip_gen: v5e
topology: v5e:2x2
jax: 0.10.0
libtpu: 0.0.40
codegen_flags: <defaults>
</compile_context>

<pallas_src>
import functools

import jax
import jax.numpy as jnp
import numpy as np
from jax.experimental import pallas as pl
from jax.experimental.pallas import tpu as pltpu

LANE = 128   # vreg lane width
SUB = 8      # sublane granularity

# X / H1 stay fully resident in VMEM when their bf16 slab is at most this big
# (leaves plenty of room for the A-tile double buffers even on v7x's 64 MiB VMEM).
X_RESIDENT_BYTES = 16 * 1024 * 1024
# Never request more scoped VMEM than this (v7x physical VMEM per TC is 64 MiB).
VMEM_CAP_BYTES = 48 * 1024 * 1024


def _round_up(x, m):
    return ((x + m - 1) // m) * m


def _choose_tile(n):
    """Return (n_pad, tile). Panels never degrade to 128-wide on large graphs:
    we pad N up to a multiple of 512 instead (cheap relative to N there)."""
    n_pad = _round_up(n, LANE)
    if n_pad <= 512:
        return n_pad, n_pad          # single row/col panel (128..512 wide)
    tile = 512
    return _round_up(n_pad, tile), tile


# ---------------------------------------------------------------------------
# Kernels
# ---------------------------------------------------------------------------
def _accumulate(a_ref, x_ref, acc_ref, *, tile_k, x_resident):
    """acc += A_panel @ X_chunk  (bf16 inputs, f32 accumulation on the MXU)."""
    k = pl.program_id(1)

    @pl.when(k == 0)
    def _():
        acc_ref[...] = jnp.zeros_like(acc_ref)

    if x_resident:
        # X lives fully in VMEM; slice the K-chunk in-VMEM (no HBM restream).
        start = pl.multiple_of(k * tile_k, tile_k)
        x_blk = x_ref[pl.ds(start, tile_k), :]
    else:
        x_blk = x_ref[...]
    acc_ref[...] += jnp.dot(a_ref[...], x_blk, preferred_element_type=jnp.float32)


def gcn_layer_kernel(a_ref, x_ref, p_ref, o_ref, acc_ref, *,
                     tile_k, x_resident, w_off, b_off, w_rows, apply_w):
    """One GCN layer: o = relu((A @ X) @ W + b)  (or relu(A @ X + b) if W pre-applied)."""
    _accumulate(a_ref, x_ref, acc_ref, tile_k=tile_k, x_resident=x_resident)

    @pl.when(pl.program_id(1) == pl.num_programs(1) - 1)
    def _():
        b = p_ref[pl.ds(b_off, 1), :]
        if apply_w:
            w = p_ref[pl.ds(w_off, w_rows), :]
            h = jnp.dot(acc_ref[...], w, preferred_element_type=jnp.float32) + b
        else:
            h = acc_ref[...] + b
        o_ref[...] = jnp.maximum(h, 0.0).astype(o_ref.dtype)


def gcn_layer_classifier_kernel(a_ref, x_ref, p_ref, o_ref, acc_ref, *,
                                tile_k, x_resident, w_off, b_off, w_rows,
                                wc_off, bc_off, wc_rows):
    """Layer 2 + classifier fused: o = relu((A @ H1) @ W2 + b2) @ Wc + bc."""
    _accumulate(a_ref, x_ref, acc_ref, tile_k=tile_k, x_resident=x_resident)

    @pl.when(pl.program_id(1) == pl.num_programs(1) - 1)
    def _():
        w2 = p_ref[pl.ds(w_off, w_rows), :]
        b2 = p_ref[pl.ds(b_off, 1), :]
        h = jnp.maximum(
            jnp.dot(acc_ref[...], w2, preferred_element_type=jnp.float32) + b2, 0.0)
        wc = p_ref[pl.ds(wc_off, wc_rows), :]
        bc = p_ref[pl.ds(bc_off, 1), :]
        o_ref[...] = (jnp.dot(h, wc, preferred_element_type=jnp.float32)
                      + bc).astype(o_ref.dtype)


# ---------------------------------------------------------------------------
# pallas_call wrapper for one (tiled) GCN layer
# ---------------------------------------------------------------------------
def _run_layer(kernel_fn, a_pad, x_pad, params, out_dtype, out_feat, *,
               tile_m, tile_k, flops, **kernel_kwargs):
    n_pad = a_pad.shape[0]
    in_feat = x_pad.shape[1]
    p_rows = params.shape[0]
    grid = (n_pad // tile_m, n_pad // tile_k)

    # Keep X / H1 fully resident in VMEM when it fits -> A_hat is the only restreamed
    # array (and it is only read once per layer).
    x_fits = n_pad * in_feat * 2 <= X_RESIDENT_BYTES
    x_resident = grid[1] > 1 and x_fits
    if x_resident:
        x_spec = pl.BlockSpec((n_pad, in_feat), lambda i, k: (0, 0))
    else:
        x_spec = pl.BlockSpec((tile_k, in_feat), lambda i, k: (k, 0))

    kern = functools.partial(kernel_fn, tile_k=tile_k, x_resident=x_resident,
                             **kernel_kwargs)

    out_itemsize = np.dtype(out_dtype).itemsize
    # Explicit VMEM footprint (pipeline double-buffers inputs/outputs) + headroom,
    # capped well under v7x's 64 MiB physical VMEM.
    a_bytes = 2 * tile_m * tile_k * 2
    x_bytes = 2 * (n_pad if x_resident else tile_k) * in_feat * 2
    p_bytes = 2 * p_rows * out_feat * 4
    acc_bytes = tile_m * in_feat * 4
    o_bytes = 2 * tile_m * out_feat * out_itemsize
    footprint = a_bytes + x_bytes + p_bytes + acc_bytes + o_bytes
    vmem_limit = int(min(max(footprint * 5 // 4 + (4 << 20), 16 << 20),
                         VMEM_CAP_BYTES))

    x_stream_mult = 1 if (x_resident or grid[1] == 1) else grid[0]
    bytes_accessed = (a_pad.size * 2
                      + x_pad.size * 2 * x_stream_mult
                      + p_rows * out_feat * 4
                      + n_pad * out_feat * out_itemsize)

    return pl.pallas_call(
        kern,
        out_shape=jax.ShapeDtypeStruct((n_pad, out_feat), out_dtype),
        grid_spec=pltpu.PrefetchScalarGridSpec(
            num_scalar_prefetch=0,
            grid=grid,
            in_specs=[
                pl.BlockSpec((tile_m, tile_k), lambda i, k: (i, k)),    # A row/col panel
                x_spec,                                                 # X (resident if it fits)
                pl.BlockSpec((p_rows, out_feat), lambda i, k: (0, 0)),  # this layer's params
            ],
            out_specs=pl.BlockSpec((tile_m, out_feat), lambda i, k: (i, 0)),
            scratch_shapes=[pltpu.VMEM((tile_m, in_feat), jnp.float32)],
        ),
        compiler_params=pltpu.CompilerParams(
            dimension_semantics=("parallel", "arbitrary"),
            vmem_limit_bytes=vmem_limit,
        ),
        cost_estimate=pl.CostEstimate(flops=int(flops), transcendentals=0,
                                      bytes_accessed=int(bytes_accessed)),
    )(a_pad, x_pad, params)


# ---------------------------------------------------------------------------
# Glue + forward
# ---------------------------------------------------------------------------
def build_norm_adj_padded(edge_index, edge_weight_param, n, n_pad,
                          dtype=jnp.bfloat16):
    """Dense normalized adjacency with self-loops (PyG gcn_norm semantics),
    scattered directly into the padded bf16 buffer (no extra f32 N^2 pass)."""
    # TODO(synk): the edge-list scatter (exp / degree / A_hat build) stays in XLA; a
    # Pallas path would need scalar-prefetch-driven gather/scatter, not worth it here.
    ew = jnp.exp(edge_weight_param)                        # torch.exp(self.edge_weight)
    row, col = edge_index[0], edge_index[1]                # row = source, col = target
    loop = jnp.arange(n, dtype=edge_index.dtype)
    row = jnp.concatenate([row, loop])
    col = jnp.concatenate([col, loop])
    w = jnp.concatenate([ew, jnp.ones((n,), jnp.float32)])     # self-loop fill value = 1.0
    deg = jnp.zeros((n,), jnp.float32).at[col].add(w)
    dinv = jnp.where(deg > 0, 1.0 / jnp.sqrt(deg), 0.0)
    norm = dinv[row] * w * dinv[col]
    # message: out[target] += norm * x[source]  =>  A_hat[target, source] += norm
    return jnp.zeros((n_pad, n_pad), dtype).at[col, row].add(norm.astype(dtype))


def gcn_ew_forward(x, edge_index, edge_weight, w1, b1, w2, b2, wc, bc):
    n, f_in = x.shape
    hidden = w1.shape[1]
    out_dim = wc.shape[1]

    n_pad, tile = _choose_tile(n)
    L_hid = _round_up(max(hidden, out_dim), LANE)
    L_in = _round_up(f_in, LANE)

    a_pad = build_norm_adj_padded(edge_index, edge_weight, n, n_pad)

    def pad_block(arr, rows, width):
        out = jnp.zeros((rows, width), jnp.float32)
        return out.at[:arr.shape[0], :arr.shape[1]].set(arr.astype(jnp.float32))

    # Layer 1 setup. If the padded input width exceeds the padded hidden width
    # (e.g. Cora's 1433 features), pre-apply X @ W1 once outside the kernel so the
    # kernel only streams/aggregates a 128-wide RHS.
    pre_transform = L_in > L_hid
    if pre_transform:
        xw = jnp.dot(x.astype(jnp.float32), w1)
        x_pad = jnp.zeros((n_pad, L_hid), jnp.bfloat16).at[:n, :hidden].set(
            xw.astype(jnp.bfloat16))
        params1 = pad_block(b1.reshape(1, -1), SUB, L_hid)
        l1_kwargs = dict(w_off=0, b_off=0, w_rows=SUB, apply_w=False)
    else:
        x_pad = jnp.zeros((n_pad, L_in), jnp.bfloat16).at[:n, :f_in].set(
            x.astype(jnp.bfloat16))
        params1 = jnp.concatenate([
            pad_block(w1, L_in, L_hid),
            pad_block(b1.reshape(1, -1), SUB, L_hid),
        ], axis=0)
        l1_kwargs = dict(w_off=0, b_off=L_in, w_rows=L_in, apply_w=True)

    flops1 = 2 * n_pad * n_pad * x_pad.shape[1]
    if l1_kwargs["apply_w"]:
        flops1 += 2 * n_pad * x_pad.shape[1] * L_hid

    # Layer 1: H1 (bf16, lane dense) = relu((A @ X) @ W1 + b1)
    h1 = _run_layer(gcn_layer_kernel, a_pad, x_pad, params1, jnp.bfloat16, L_hid,
                    tile_m=tile, tile_k=tile, flops=flops1, **l1_kwargs)

    # Layer 2 + classifier fused: out = relu((A @ H1) @ W2 + b2) @ Wc + bc
    params2 = jnp.concatenate([
        pad_block(w2, L_hid, L_hid),
        pad_block(b2.reshape(1, -1), SUB, L_hid),
        pad_block(wc, L_hid, L_hid),
        pad_block(bc.reshape(1, -1), SUB, L_hid),
    ], axis=0)
    l2_kwargs = dict(w_off=0, b_off=L_hid, w_rows=L_hid,
                     wc_off=L_hid + SUB, bc_off=2 * L_hid + SUB, wc_rows=L_hid)
    flops2 = 2 * n_pad * n_pad * L_hid + 4 * n_pad * L_hid * L_hid

    out = _run_layer(gcn_layer_classifier_kernel, a_pad, h1, params2,
                     jnp.float32, L_hid,
                     tile_m=tile, tile_k=tile, flops=flops2, **l2_kwargs)

    return jnp.squeeze(out[:n, :out_dim])     # matches .squeeze() in the torch forward


def build_norm_adj_f32(edge_index, edge_weight_param, n):
    """Unpadded f32 normalized adjacency for the pure-JAX reference."""
    ew = jnp.exp(edge_weight_param)
    row, col = edge_index[0], edge_index[1]
    loop = jnp.arange(n, dtype=edge_index.dtype)
    row = jnp.concatenate([row, loop])
    col = jnp.concatenate([col, loop])
    w = jnp.concatenate([ew, jnp.ones((n,), jnp.float32)])
    deg = jnp.zeros((n,), jnp.float32).at[col].add(w)
    dinv = jnp.where(deg > 0, 1.0 / jnp.sqrt(deg), 0.0)
    norm = dinv[row] * w * dinv[col]
    return jnp.zeros((n, n), jnp.float32).at[col, row].add(norm)


def ref_forward(a_hat, x, w1, b1, w2, b2, wc, bc):
    """Pure-JAX reference mirroring the kernel's bf16 storage of A, X and H1."""
    hi = jax.lax.Precision.HIGHEST
    aq = a_hat.astype(jnp.bfloat16).astype(jnp.float32)
    xq = x.astype(jnp.bfloat16).astype(jnp.float32)
    h1 = jnp.maximum(jnp.dot(jnp.dot(aq, xq, precision=hi), w1, precision=hi) + b1, 0.0)
    h1 = h1.astype(jnp.bfloat16).astype(jnp.float32)
    h2 = jnp.maximum(jnp.dot(jnp.dot(aq, h1, precision=hi), w2, precision=hi) + b2, 0.0)
    return jnp.squeeze(jnp.dot(h2, wc, precision=hi) + bc)


if __name__ == "__main__":
    # Small shapes consistent with the module's forward.
    N, E = 16, 32                       # nodes, edges
    in_dim, hidden_dim, out_dim = 8, 32, 4

    key = jax.random.PRNGKey(0)
    k_x, k_src, k_dst, k_w1, k_b1, k_w2, k_b2, k_wc, k_bc = jax.random.split(key, 9)

    x = jax.random.normal(k_x, (N, in_dim), jnp.float32)
    edge_index = jnp.stack([
        jax.random.randint(k_src, (E,), 0, N),
        jax.random.randint(k_dst, (E,), 0, N),
    ]).astype(jnp.int32)

    # Parameters (deterministic init; shapes match GCN_EW.__init__)
    edge_weight = jnp.zeros((E,), jnp.float32)                       # nn.Parameter(zeros(E))
    w1 = jax.random.normal(k_w1, (in_dim, hidden_dim), jnp.float32) / np.sqrt(in_dim)
    b1 = jax.random.normal(k_b1, (hidden_dim,), jnp.float32) * 0.01
    w2 = jax.random.normal(k_w2, (hidden_dim, hidden_dim), jnp.float32) / np.sqrt(hidden_dim)
    b2 = jax.random.normal(k_b2, (hidden_dim,), jnp.float32) * 0.01
    wc = jax.random.normal(k_wc, (hidden_dim, out_dim), jnp.float32) / np.sqrt(hidden_dim)
    bc = jax.random.normal(k_bc, (out_dim,), jnp.float32) * 0.01

    fwd = jax.jit(gcn_ew_forward)
    out = jax.block_until_ready(fwd(x, edge_index, edge_weight, w1, b1, w2, b2, wc, bc))

    a_hat = build_norm_adj_f32(edge_index, edge_weight, N)
    ref = ref_forward(a_hat, x, w1, b1, w2, b2, wc, bc)
    np.testing.assert_allclose(np.asarray(out), np.asarray(ref), rtol=2e-2, atol=2e-2)

    print("KERNEL_OK")
</pallas_src>

<mosaic_0001>
module attributes {stable_mosaic.version = 11 : i64} {
  func.func @gcn_layer_kernel(%arg0: i32, %arg1: i32, %arg2: memref<128x128xbf16, #tpu.memory_space<vmem>>, %arg3: memref<128x128xbf16, #tpu.memory_space<vmem>>, %arg4: memref<136x128xf32, #tpu.memory_space<vmem>>, %arg5: memref<128x128xbf16, #tpu.memory_space<vmem>>, %arg6: memref<128x128xf32, #tpu.memory_space<vmem>>) attributes {dimension_semantics = [#tpu.dimension_semantics<parallel>, #tpu.dimension_semantics<arbitrary>], iteration_bounds = array<i64: 1, 1>, scalar_prefetch = 0 : i64, scratch_operands = 1 : i64, tpu.core_type = #tpu.core_type<tc>, window_params = [{transform_indices = @transform_0, window_bounds = array<i64: 128, 128>}, {transform_indices = @transform_1, window_bounds = array<i64: 128, 128>}, {pipeline_mode = #tpu.pipeline_mode<synchronous>, transform_indices = @transform_2, window_bounds = array<i64: 136, 128>}, {transform_indices = @transform_3, window_bounds = array<i64: 128, 128>}]} {
    %c0_i32 = arith.constant 0 : i32
    %0 = arith.cmpi eq, %arg1, %c0_i32 : i32
    %1 = arith.extui %0 : i1 to i32
    %c0_i32_0 = arith.constant 0 : i32
    %2 = arith.cmpi ne, %1, %c0_i32_0 : i32
    scf.if %2 {
      %cst_10 = arith.constant 0.000000e+00 : f32
      %12 = vector.broadcast %cst_10 : f32 to vector<128x128xf32>
      %c0_11 = arith.constant 0 : index
      %c0_12 = arith.constant 0 : index
      %13 = vector.load %arg6[%c0_11, %c0_12] : memref<128x128xf32, #tpu.memory_space<vmem>>, vector<128x128xf32>
      tpu.vector_store %arg6[%c0_11, %c0_12], %12 {strides = array<i32>} : memref<128x128xf32, #tpu.memory_space<vmem>>, vector<128x128xf32>,
    } else {
    }
    %c0 = arith.constant 0 : index
    %c0_1 = arith.constant 0 : index
    %3 = vector.load %arg3[%c0, %c0_1] : memref<128x128xbf16, #tpu.memory_space<vmem>>, vector<128x128xbf16>
    %c0_2 = arith.constant 0 : index
    %c0_3 = arith.constant 0 : index
    %4 = vector.load %arg6[%c0_2, %c0_3] : memref<128x128xf32, #tpu.memory_space<vmem>>, vector<128x128xf32>
    %c0_4 = arith.constant 0 : index
    %c0_5 = arith.constant 0 : index
    %5 = vector.load %arg2[%c0_4, %c0_5] : memref<128x128xbf16, #tpu.memory_space<vmem>>, vector<128x128xbf16>
    %cst = arith.constant dense<0.000000e+00> : vector<128x128xf32>
    %6 = tpu.matmul %5, %3, %cst {dimension_numbers = #tpu.dot_dimension_numbers<[1], [0], [0], [1], [0, 0, 1, 1], [], []>} : vector<128x128xbf16>, vector<128x128xbf16>, vector<128x128xf32> -> vector<128x128xf32>
    %7 = arith.addf %4, %6 : vector<128x128xf32>
    %c0_6 = arith.constant 0 : index
    %c0_7 = arith.constant 0 : index
    %8 = vector.load %arg6[%c0_6, %c0_7] : memref<128x128xf32, #tpu.memory_space<vmem>>, vector<128x128xf32>
    tpu.vector_store %arg6[%c0_6, %c0_7], %7 {strides = array<i32>} : memref<128x128xf32, #tpu.memory_space<vmem>>, vector<128x128xf32>,
    %c0_i32_8 = arith.constant 0 : i32
    %9 = arith.cmpi eq, %arg1, %c0_i32_8 : i32
    %10 = arith.extui %9 : i1 to i32
    %c0_i32_9 = arith.constant 0 : i32
    %11 = arith.cmpi ne, %10, %c0_i32_9 : i32
    scf.if %11 {
      %c128 = arith.constant 128 : index
      %c0_10 = arith.constant 0 : index
      %12 = vector.load %arg4[%c128, %c0_10] : memref<136x128xf32, #tpu.memory_space<vmem>>, vector<1x128xf32>
      %c0_11 = arith.constant 0 : index
      %c0_12 = arith.constant 0 : index
      %13 = vector.load %arg4[%c0_11, %c0_12] : memref<136x128xf32, #tpu.memory_space<vmem>>, vector<128x128xf32>
      %c0_13 = arith.constant 0 : index
      %c0_14 = arith.constant 0 : index
      %14 = vector.load %arg6[%c0_13, %c0_14] : memref<128x128xf32, #tpu.memory_space<vmem>>, vector<128x128xf32>
      %cst_15 = arith.constant dense<0.000000e+00> : vector<128x128xf32>
      %15 = tpu.matmul %14, %13, %cst_15 {dimension_numbers = #tpu.dot_dimension_numbers<[1], [0], [0], [1], [0, 0, 1, 1], [], []>} : vector<128x128xf32>, vector<128x128xf32>, vector<128x128xf32> -> vector<128x128xf32>
      %16 = vector.broadcast %12 : vector<1x128xf32> to vector<128x128xf32>
      %17 = arith.addf %15, %16 : vector<128x128xf32>
      %cst_16 = arith.constant 0.000000e+00 : f32
      %18 = vector.broadcast %cst_16 : f32 to vector<128x128xf32>
      %19 = arith.maximumf %17, %18 : vector<128x128xf32>
      %20 = arith.truncf %19 : vector<128x128xf32> to vector<128x128xbf16>
      %c0_17 = arith.constant 0 : index
      %c0_18 = arith.constant 0 : index
      %21 = vector.load %arg5[%c0_17, %c0_18] : memref<128x128xbf16, #tpu.memory_space<vmem>>, vector<128x128xbf16>
      tpu.vector_store %arg5[%c0_17, %c0_18], %20 {strides = array<i32>} : memref<128x128xbf16, #tpu.memory_space<vmem>>, vector<128x128xbf16>,
    } else {
    }
    return
  }
  func.func @transform_0(%arg0: i32, %arg1: i32) -> (i32, i32) {
    %c0_i32 = arith.constant 0 : i32
    return %arg0, %arg1 : i32, i32
  }
  func.func @transform_1(%arg0: i32, %arg1: i32) -> (i32, i32) {
    %c0_i32 = arith.constant 0 : i32
    %c0_i32_0 = arith.constant 0 : i32
    return %arg1, %c0_i32 : i32, i32
  }
  func.func @transform_2(%arg0: i32, %arg1: i32) -> (i32, i32) {
    %c0_i32 = arith.constant 0 : i32
    %c0_i32_0 = arith.constant 0 : i32
    %c0_i32_1 = arith.constant 0 : i32
    return %c0_i32, %c0_i32_0 : i32, i32
  }
  func.func @transform_3(%arg0: i32, %arg1: i32) -> (i32, i32) {
    %c0_i32 = arith.constant 0 : i32
    %c0_i32_0 = arith.constant 0 : i32
    return %arg0, %c0_i32 : i32, i32
  }
}

module attributes {stable_mosaic.version = 11 : i64} {
  func.func @gcn_layer_classifier_kernel(%arg0: i32, %arg1: i32, %arg2: memref<128x128xbf16, #tpu.memory_space<vmem>>, %arg3: memref<128x128xbf16, #tpu.memory_space<vmem>>, %arg4: memref<272x128xf32, #tpu.memory_space<vmem>>, %arg5: memref<128x128xf32, #tpu.memory_space<vmem>>, %arg6: memref<128x128xf32, #tpu.memory_space<vmem>>) attributes {dimension_semantics = [#tpu.dimension_semantics<parallel>, #tpu.dimension_semantics<arbitrary>], iteration_bounds = array<i64: 1, 1>, scalar_prefetch = 0 : i64, scratch_operands = 1 : i64, tpu.core_type = #tpu.core_type<tc>, window_params = [{transform_indices = @transform_0, window_bounds = array<i64: 128, 128>}, {transform_indices = @transform_1, window_bounds = array<i64: 128, 128>}, {pipeline_mode = #tpu.pipeline_mode<synchronous>, transform_indices = @transform_2, window_bounds = array<i64: 272, 128>}, {transform_indices = @transform_3, window_bounds = array<i64: 128, 128>}]} {
    %c0_i32 = arith.constant 0 : i32
    %0 = arith.cmpi eq, %arg1, %c0_i32 : i32
    %1 = arith.extui %0 : i1 to i32
    %c0_i32_0 = arith.constant 0 : i32
    %2 = arith.cmpi ne, %1, %c0_i32_0 : i32
    scf.if %2 {
      %cst_10 = arith.constant 0.000000e+00 : f32
      %12 = vector.broadcast %cst_10 : f32 to vector<128x128xf32>
      %c0_11 = arith.constant 0 : index
      %c0_12 = arith.constant 0 : index
      %13 = vector.load %arg6[%c0_11, %c0_12] : memref<128x128xf32, #tpu.memory_space<vmem>>, vector<128x128xf32>
      tpu.vector_store %arg6[%c0_11, %c0_12], %12 {strides = array<i32>} : memref<128x128xf32, #tpu.memory_space<vmem>>, vector<128x128xf32>,
    } else {
    }
    %c0 = arith.constant 0 : index
    %c0_1 = arith.constant 0 : index
    %3 = vector.load %arg3[%c0, %c0_1] : memref<128x128xbf16, #tpu.memory_space<vmem>>, vector<128x128xbf16>
    %c0_2 = arith.constant 0 : index
    %c0_3 = arith.constant 0 : index
    %4 = vector.load %arg6[%c0_2, %c0_3] : memref<128x128xf32, #tpu.memory_space<vmem>>, vector<128x128xf32>
    %c0_4 = arith.constant 0 : index
    %c0_5 = arith.constant 0 : index
    %5 = vector.load %arg2[%c0_4, %c0_5] : memref<128x128xbf16, #tpu.memory_space<vmem>>, vector<128x128xbf16>
    %cst = arith.constant dense<0.000000e+00> : vector<128x128xf32>
    %6 = tpu.matmul %5, %3, %cst {dimension_numbers = #tpu.dot_dimension_numbers<[1], [0], [0], [1], [0, 0, 1, 1], [], []>} : vector<128x128xbf16>, vector<128x128xbf16>, vector<128x128xf32> -> vector<128x128xf32>
    %7 = arith.addf %4, %6 : vector<128x128xf32>
    %c0_6 = arith.constant 0 : index
    %c0_7 = arith.constant 0 : index
    %8 = vector.load %arg6[%c0_6, %c0_7] : memref<128x128xf32, #tpu.memory_space<vmem>>, vector<128x128xf32>
    tpu.vector_store %arg6[%c0_6, %c0_7], %7 {strides = array<i32>} : memref<128x128xf32, #tpu.memory_space<vmem>>, vector<128x128xf32>,
    %c0_i32_8 = arith.constant 0 : i32
    %9 = arith.cmpi eq, %arg1, %c0_i32_8 : i32
    %10 = arith.extui %9 : i1 to i32
    %c0_i32_9 = arith.constant 0 : i32
    %11 = arith.cmpi ne, %10, %c0_i32_9 : i32
    scf.if %11 {
      %c0_10 = arith.constant 0 : index
      %c0_11 = arith.constant 0 : index
      %12 = vector.load %arg4[%c0_10, %c0_11] : memref<272x128xf32, #tpu.memory_space<vmem>>, vector<128x128xf32>
      %c128 = arith.constant 128 : index
      %c0_12 = arith.constant 0 : index
      %13 = vector.load %arg4[%c128, %c0_12] : memref<272x128xf32, #tpu.memory_space<vmem>>, vector<1x128xf32>
      %c0_13 = arith.constant 0 : index
      %c0_14 = arith.constant 0 : index
      %14 = vector.load %arg6[%c0_13, %c0_14] : memref<128x128xf32, #tpu.memory_space<vmem>>, vector<128x128xf32>
      %cst_15 = arith.constant dense<0.000000e+00> : vector<128x128xf32>
      %15 = tpu.matmul %14, %12, %cst_15 {dimension_numbers = #tpu.dot_dimension_numbers<[1], [0], [0], [1], [0, 0, 1, 1], [], []>} : vector<128x128xf32>, vector<128x128xf32>, vector<128x128xf32> -> vector<128x128xf32>
      %16 = vector.broadcast %13 : vector<1x128xf32> to vector<128x128xf32>
      %17 = arith.addf %15, %16 : vector<128x128xf32>
      %cst_16 = arith.constant 0.000000e+00 : f32
      %18 = vector.broadcast %cst_16 : f32 to vector<128x128xf32>
      %19 = arith.maximumf %17, %18 : vector<128x128xf32>
      %c136 = arith.constant 136 : index
      %c0_17 = arith.constant 0 : index
      %20 = vector.load %arg4[%c136, %c0_17] : memref<272x128xf32, #tpu.memory_space<vmem>>, vector<128x128xf32>
      %c264 = arith.constant 264 : index
      %c0_18 = arith.constant 0 : index
      %21 = vector.load %arg4[%c264, %c0_18] : memref<272x128xf32, #tpu.memory_space<vmem>>, vector<1x128xf32>
      %cst_19 = arith.constant dense<0.000000e+00> : vector<128x128xf32>
      %22 = tpu.matmul %19, %20, %cst_19 {dimension_numbers = #tpu.dot_dimension_numbers<[1], [0], [0], [1], [0, 0, 1, 1], [], []>} : vector<128x128xf32>, vector<128x128xf32>, vector<128x128xf32> -> vector<128x128xf32>
      %23 = vector.broadcast %21 : vector<1x128xf32> to vector<128x128xf32>
      %24 = arith.addf %22, %23 : vector<128x128xf32>
      %c0_20 = arith.constant 0 : index
      %c0_21 = arith.constant 0 : index
      %25 = vector.load %arg5[%c0_20, %c0_21] : memref<128x128xf32, #tpu.memory_space<vmem>>, vector<128x128xf32>
      tpu.vector_store %arg5[%c0_20, %c0_21], %24 {strides = array<i32>} : memref<128x128xf32, #tpu.memory_space<vmem>>, vector<128x128xf32>,
    } else {
    }
    return
  }
  func.func @transform_0(%arg0: i32, %arg1: i32) -> (i32, i32) {
    %c0_i32 = arith.constant 0 : i32
    return %arg0, %arg1 : i32, i32
  }
  func.func @transform_1(%arg0: i32, %arg1: i32) -> (i32, i32) {
    %c0_i32 = arith.constant 0 : i32
    %c0_i32_0 = arith.constant 0 : i32
    return %arg1, %c0_i32 : i32, i32
  }
  func.func @transform_2(%arg0: i32, %arg1: i32) -> (i32, i32) {
    %c0_i32 = arith.constant 0 : i32
    %c0_i32_0 = arith.constant 0 : i32
    %c0_i32_1 = arith.constant 0 : i32
    return %c0_i32, %c0_i32_0 : i32, i32
  }
  func.func @transform_3(%arg0: i32, %arg1: i32) -> (i32, i32) {
    %c0_i32 = arith.constant 0 : i32
    %c0_i32_0 = arith.constant 0 : i32
    return %arg0, %c0_i32 : i32, i32
  }
}

</mosaic_0001>

<bundles_post_ra>
// kernel: gcn_ew_forward.2
= control target key start
LH: loop header
LB: loop body
LE: loop exit
PB: predicated region body
PF: predicated region fallthrough
CT: control target
= control target key end

     0   :  { %s708_s1 = inlined_call_operand.vmem [shape: bf16[128,128], index: 1, kind: input, shape index: {}]   ;;  %s709_s2 = inlined_call_operand.vmem [shape: f32[136,128], index: 2, kind: input, shape index: {}]   ;;  %s710_s0 = inlined_call_operand.vmem [shape: bf16[128,128], index: 0, kind: input, shape index: {}]   ;;  %s711_s3 = inlined_call_operand.vmem [shape: bf16[128,128], index: 3, kind: output, shape index: {}]  }
   0x1   :  { %v484_v0 = vld [vmem:[%s708_s1 + $0x38] sm:$0xff]  ;;  %v483_v1 = vld [vmem:[%s708_s1 + $0x30] sm:$0xff]  ;;  %v482_v2 = vld [vmem:[%s708_s1 + $0x28] sm:$0xff] }
   0x2   :  { %540 = vmatpush.bf16.msra.mxu2 %v484_v0  ;;  %178 = vmatpush.bf16.msra.mxu0 %v484_v0  ;;  %v481_v3 = vld [vmem:[%s708_s1 + $0x20] sm:$0xff]  ;;  %v480_v4 = vld [vmem:[%s708_s1 + $0x18] sm:$0xff]  ;;  %v479_v5 = vld [vmem:[%s708_s1 + $0x10] sm:$0xff] }
   0x3   :  { %v478_v6 = vld [vmem:[%s708_s1 + $0x8] sm:$0xff]  ;;  %v477_v7 = vld [vmem:[%s708_s1] sm:$0xff]  ;;  %v278_v12 = vld [vmem:[%s709_s2 + $0x78] sm:$0xff] }
   0x4   :  { %v489_v8 = vld [vmem:[%s710_s0 + $0x20] sm:$0xff]  ;;  %v490_v10 = vld [vmem:[%s710_s0 + $0x28] sm:$0xff]  ;;  %v277_v13 = vld [vmem:[%s709_s2 + $0x70] sm:$0xff]  ;;  %296 = vmatpush.msra.mxu1 %v278_v12  ;;  %548 = vmatpush.msra.mxu3 %v278_v12 }
   0x5   :  { %v485_v9 = vld [vmem:[%s710_s0] sm:$0xff]  ;;  %v486_v11 = vld [vmem:[%s710_s0 + $0x8] sm:$0xff]  ;;  %v274_v16 = vld [vmem:[%s709_s2 + $0x58] sm:$0xff] }
   0x6   :  { %541 = vmatpush.bf16.msra.mxu2 %v483_v1  ;;  %179 = vmatpush.bf16.msra.mxu0 %v483_v1  ;;  %v276_v14 = vld [vmem:[%s709_s2 + $0x68] sm:$0xff]  ;;  %v275_v15 = vld [vmem:[%s709_s2 + $0x60] sm:$0xff]  ;;  %v273_v17 = vld [vmem:[%s709_s2 + $0x50] sm:$0xff] }
   0x7   :  { %297 = vmatpush.msra.mxu1 %v277_v13  ;;  %549 = vmatpush.msra.mxu3 %v277_v13  ;;  %v272_v18 = vld [vmem:[%s709_s2 + $0x48] sm:$0xff]  ;;  %v491_v19 = vld [vmem:[%s710_s0 + $0x30] sm:$0xff]  ;;  %v271_v21 = vld [vmem:[%s709_s2 + $0x40] sm:$0xff] }
   0x8   :  { %v487_v20 = vld [vmem:[%s710_s0 + $0x10] sm:$0xff]  ;;  %v270_v22 = vld [vmem:[%s709_s2 + $0x38] sm:$0xff]  ;;  %v268_v24 = vld [vmem:[%s709_s2 + $0x28] sm:$0xff] }
   0x9   :  { %298 = vmatpush.msra.mxu1 %v276_v14  ;;  %550 = vmatpush.msra.mxu3 %v276_v14  ;;  %v269_v23 = vld [vmem:[%s709_s2 + $0x30] sm:$0xff]  ;;  %v267_v25 = vld [vmem:[%s709_s2 + $0x20] sm:$0xff]  ;;  %v266_v26 = vld [vmem:[%s709_s2 + $0x18] sm:$0xff] }
   0xa   :  { %542 = vmatpush.bf16.msra.mxu2 %v482_v2  ;;  %180 = vmatpush.bf16.msra.mxu0 %v482_v2  ;;  %v265_v27 = vld [vmem:[%s709_s2 + $0x10] sm:$0xff]  ;;  %v264_v28 = vld [vmem:[%s709_s2 + $0x8] sm:$0xff]  ;;  %v492_v29 = vld [vmem:[%s710_s0 + $0x38] sm:$0xff] }
   0xb   :  { %299 = vmatpush.msra.mxu1 %v275_v15  ;;  %551 = vmatpush.msra.mxu3 %v275_v15  ;;  %v488_v30 = vld [vmem:[%s710_s0 + $0x18] sm:$0xff]  ;;  %v263_v31 = vld [vmem:[%s709_s2] sm:$0xff] }
   0xc   :  { %v564_v49 = vld [vmem:[%s709_s2 + $0x80] ss:$0 sm:$0xff] }
   0xd   :  { %300 = vmatpush.msra.mxu1 %v274_v16  ;;  %552 = vmatpush.msra.mxu3 %v274_v16 }
   0xe   :  { %543 = vmatpush.bf16.msra.mxu2 %v481_v3  ;;  %181 = vmatpush.bf16.msra.mxu0 %v481_v3 }
   0xf   :  { %301 = vmatpush.msra.mxu1 %v273_v17  ;;  %553 = vmatpush.msra.mxu3 %v273_v17 }
  0x11   :  { %302 = vmatpush.msra.mxu1 %v272_v18  ;;  %554 = vmatpush.msra.mxu3 %v272_v18 }
  0x12   :  { %544 = vmatpush.bf16.msra.mxu2 %v480_v4  ;;  %182 = vmatpush.bf16.msra.mxu0 %v480_v4 }
  0x13   :  { %303 = vmatpush.msra.mxu1 %v271_v21  ;;  %555 = vmatpush.msra.mxu3 %v271_v21 }
  0x15   :  { %304 = vmatpush.msra.mxu1 %v270_v22  ;;  %556 = vmatpush.msra.mxu3 %v270_v22 }
  0x16   :  { %545 = vmatpush.bf16.msra.mxu2 %v479_v5  ;;  %183 = vmatpush.bf16.msra.mxu0 %v479_v5 }
  0x17   :  { %305 = vmatpush.msra.mxu1 %v269_v23  ;;  %557 = vmatpush.msra.mxu3 %v269_v23 }
  0x19   :  { %306 = vmatpush.msra.mxu1 %v268_v24  ;;  %558 = vmatpush.msra.mxu3 %v268_v24 }
  0x1a   :  { %546 = vmatpush.bf16.msra.mxu2 %v478_v6  ;;  %184 = vmatpush.bf16.msra.mxu0 %v478_v6 }
  0x1b   :  { %307 = vmatpush.msra.mxu1 %v267_v25  ;;  %559 = vmatpush.msra.mxu3 %v267_v25 }
  0x1d   :  { %308 = vmatpush.msra.mxu1 %v266_v26  ;;  %560 = vmatpush.msra.mxu3 %v266_v26 }
  0x1e   :  { %547 = vmatpush.bf16.msra.mxu2 %v477_v7  ;;  %185 = vmatpush.bf16.msra.mxu0 %v477_v7 }
  0x1f   :  { %309 = vmatpush.msra.mxu1 %v265_v27  ;;  %561 = vmatpush.msra.mxu3 %v265_v27 }
  0x21   :  { %206 = vmatmul.bf16.vlgmr.msra.gmra.mxu2 %v489_v8  ;;  %186 = vmatmul.bf16.vlgmr.msra.gmra.mxu0 %v485_v9 }
  0x22   :  { %310 = vmatpush.msra.mxu1 %v264_v28  ;;  %562 = vmatpush.msra.mxu3 %v264_v28 }
  0x24   :  { %311 = vmatpush.msra.mxu1 %v263_v31  ;;  %563 = vmatpush.msra.mxu3 %v263_v31 }
  0x31   :  { %211 = vmatmul.bf16.gmra.mxu2 %v490_v10  ;;  %191 = vmatmul.bf16.gmra.mxu0 %v486_v11 }
  0x41   :  { %216 = vmatmul.bf16.gmra.mxu2 %v491_v19  ;;  %196 = vmatmul.bf16.gmra.mxu0 %v487_v20 }
  0x51   :  { %221 = vmatmul.bf16.gmra.mxu2 %v492_v29  ;;  %201 = vmatmul.bf16.gmra.mxu0 %v488_v30 }
  0x9e   :  { %v187_v32 = vpop.f32.mrf.mxu0 }
  0x9f   :  { %312 = vmatmul.f32.vlgmr.msra.gmra.mxu1 %v187_v32 }
  0xa4   :  { %v207_v33 = vpop.f32.mrf.mxu2 }
  0xa5   :  { %336 = vmatmul.f32.vlgmr.msra.gmra.mxu3 %v207_v33 }
  0xa6   :  { %v189_v34 = vpop.f32.mrf.mxu0 }
  0xa7   :  { %315 = vmatmul.f32.gmra.mxu1 %v189_v34 }
  0xac   :  { %v209_v35 = vpop.f32.mrf.mxu2 }
  0xad   :  { %339 = vmatmul.f32.gmra.mxu3 %v209_v35 }
  0xae   :  { %v192_v36 = vpop.f32.mrf.mxu0 }
  0xaf   :  { %318 = vmatmul.f32.gmra.mxu1 %v192_v36 }
  0xb4   :  { %v212_v37 = vpop.f32.mrf.mxu2 }
  0xb5   :  { %342 = vmatmul.f32.gmra.mxu3 %v212_v37 }
  0xb6   :  { %v194_v38 = vpop.f32.mrf.mxu0 }
  0xb7   :  { %321 = vmatmul.f32.gmra.mxu1 %v194_v38 }
  0xbc   :  { %v214_v39 = vpop.f32.mrf.mxu2 }
  0xbd   :  { %345 = vmatmul.f32.gmra.mxu3 %v214_v39 }
  0xbe   :  { %v197_v40 = vpop.f32.mrf.mxu0 }
  0xbf   :  { %324 = vmatmul.f32.gmra.mxu1 %v197_v40 }
  0xc4   :  { %v217_v41 = vpop.f32.mrf.mxu2 }
  0xc5   :  { %348 = vmatmul.f32.gmra.mxu3 %v217_v41 }
  0xc6   :  { %v199_v42 = vpop.f32.mrf.mxu0 }
  0xc7   :  { %327 = vmatmul.f32.gmra.mxu1 %v199_v42 }
  0xcc   :  { %v219_v43 = vpop.f32.mrf.mxu2 }
  0xcd   :  { %351 = vmatmul.f32.gmra.mxu3 %v219_v43 }
  0xce   :  { %v202_v44 = vpop.f32.mrf.mxu0 }
  0xcf   :  { %330 = vmatmul.f32.gmra.mxu1 %v202_v44 }
  0xd4   :  { %v222_v45 = vpop.f32.mrf.mxu2 }
  0xd5   :  { %354 = vmatmul.f32.gmra.mxu3 %v222_v45 }
  0xd6   :  { %v204_v46 = vpop.f32.mrf.mxu0 }
  0xd7   :  { %333 = vmatmul.f32.gmra.mxu1 %v204_v46 }
  0xdc   :  { %v224_v47 = vpop.f32.mrf.mxu2 }
  0xdd   :  { %357 = vmatmul.f32.gmra.mxu3 %v224_v47 }
 0x11c   :  { %v313_v48 = vpop.f32.mrf.mxu1 }
 0x11d   :  { %v314_v50 = vadd.f32 %v564_v49, %v313_v48 }
 0x11f   :  { %v361_v52 = vmax.f32 %v314_v50, 0.0 }
 0x124   :  { %v316_v51 = vpop.f32.mrf.mxu1 }
 0x125   :  { %v317_v53 = vadd.f32 %v564_v49, %v316_v51 }
 0x127   :  { %v362_v54 = vmax.f32 %v317_v53, 0.0 }
 0x128   :  { %v337_v55 = vpop.f32.mrf.mxu3 }
 0x129   :  { %v496_v56 = vpack.c.bf16 %v362_v54, %v361_v52  ;;  %v338_v58 = vadd.f32 %v564_v49, %v337_v55 }
 0x12b   :  { %497 = vst [vmem:[%s711_s3] sm:$0xff] %v496_v56   ;;  %v369_v62 = vmax.f32 %v338_v58, 0.0 }
 0x12c   :  { %v319_v57 = vpop.f32.mrf.mxu1 }
 0x12d   :  { %v320_v60 = vadd.f32 %v564_v49, %v319_v57 }
 0x12f   :  { %v363_v1 = vmax.f32 %v320_v60, 0.0 }
 0x130   :  { %v340_v59 = vpop.f32.mrf.mxu3 }
 0x131   :  { %v341_v61 = vadd.f32 %v564_v49, %v340_v59 }
 0x133   :  { %v370_v63 = vmax.f32 %v341_v61, 0.0 }
 0x134   :  { %v322_v0 = vpop.f32.mrf.mxu1 }
 0x135   :  { %v516_v2 = vpack.c.bf16 %v370_v63, %v369_v62  ;;  %v323_v3 = vadd.f32 %v564_v49, %v322_v0 }
 0x137   :  { %536 = vst [vmem:[%s711_s3 + $0x20] sm:$0xff] %v516_v2   ;;  %v364_v4 = vmax.f32 %v323_v3, 0.0 }
 0x138   :  { %v343_v5 = vpop.f32.mrf.mxu3 }
 0x139   :  { %v501_v6 = vpack.c.bf16 %v364_v4, %v363_v1  ;;  %v344_v8 = vadd.f32 %v564_v49, %v343_v5 }
 0x13b   :  { %533 = vst [vmem:[%s711_s3 + $0x8] sm:$0xff] %v501_v6   ;;  %v371_v12 = vmax.f32 %v344_v8, 0.0 }
 0x13c   :  { %v325_v7 = vpop.f32.mrf.mxu1 }
 0x13d   :  { %v326_v10 = vadd.f32 %v564_v49, %v325_v7 }
 0x13f   :  { %v365_v15 = vmax.f32 %v326_v10, 0.0 }
 0x140   :  { %v346_v9 = vpop.f32.mrf.mxu3 }
 0x141   :  { %v347_v11 = vadd.f32 %v564_v49, %v346_v9 }
 0x143   :  { %v372_v13 = vmax.f32 %v347_v11, 0.0 }
 0x144   :  { %v328_v14 = vpop.f32.mrf.mxu1 }
 0x145   :  { %v521_v16 = vpack.c.bf16 %v372_v13, %v371_v12  ;;  %v329_v17 = vadd.f32 %v564_v49, %v328_v14 }
 0x147   :  { %537 = vst [vmem:[%s711_s3 + $0x28] sm:$0xff] %v521_v16   ;;  %v366_v18 = vmax.f32 %v329_v17, 0.0 }
 0x148   :  { %v349_v19 = vpop.f32.mrf.mxu3 }
 0x149   :  { %v506_v20 = vpack.c.bf16 %v366_v18, %v365_v15  ;;  %v350_v22 = vadd.f32 %v564_v49, %v349_v19 }
 0x14b   :  { %534 = vst [vmem:[%s711_s3 + $0x10] sm:$0xff] %v506_v20   ;;  %v373_v26 = vmax.f32 %v350_v22, 0.0 }
 0x14c   :  { %v331_v21 = vpop.f32.mrf.mxu1 }
 0x14d   :  { %v332_v24 = vadd.f32 %v564_v49, %v331_v21 }
 0x14f   :  { %v367_v29 = vmax.f32 %v332_v24, 0.0 }
 0x150   :  { %v352_v23 = vpop.f32.mrf.mxu3 }
 0x151   :  { %v353_v25 = vadd.f32 %v564_v49, %v352_v23 }
 0x153   :  { %v374_v27 = vmax.f32 %v353_v25, 0.0 }
 0x154   :  { %v334_v28 = vpop.f32.mrf.mxu1 }
 0x155   :  { %v526_v30 = vpack.c.bf16 %v374_v27, %v373_v26  ;;  %v335_v31 = vadd.f32 %v564_v49, %v334_v28 }
 0x157   :  { %538 = vst [vmem:[%s711_s3 + $0x30] sm:$0xff] %v526_v30   ;;  %v368_v32 = vmax.f32 %v335_v31, 0.0 }
 0x158   :  { %v355_v33 = vpop.f32.mrf.mxu3 }
 0x159   :  { %v511_v34 = vpack.c.bf16 %v368_v32, %v367_v29  ;;  %v356_v35 = vadd.f32 %v564_v49, %v355_v33 }
 0x15b   :  { %535 = vst [vmem:[%s711_s3 + $0x18] sm:$0xff] %v511_v34   ;;  %v375_v38 = vmax.f32 %v356_v35, 0.0 }
 0x160   :  { %v358_v36 = vpop.f32.mrf.mxu3 }
 0x161   :  { %v359_v37 = vadd.f32 %v564_v49, %v358_v36 }
 0x163   :  { %v376_v39 = vmax.f32 %v359_v37, 0.0 }
 0x165   :  { %v531_v40 = vpack.c.bf16 %v376_v39, %v375_v38 }
 0x167   :  { %539 = vst [vmem:[%s711_s3 + $0x38] sm:$0xff] %v531_v40  }

// kernel: gcn_ew_forward.3
= control target key start
LH: loop header
LB: loop body
LE: loop exit
PB: predicated region body
PF: predicated region fallthrough
CT: control target
= control target key end

     0   :  { %s820_s1 = inlined_call_operand.vmem [shape: bf16[128,128], index: 1, kind: input, shape index: {}]   ;;  %s821_s2 = inlined_call_operand.vmem [shape: f32[272,128], index: 2, kind: input, shape index: {}]   ;;  %s822_s0 = inlined_call_operand.vmem [shape: bf16[128,128], index: 0, kind: input, shape index: {}]   ;;  %s823_s3 = inlined_call_operand.vmem [shape: f32[128,128], index: 3, kind: output, shape index: {}]  }
   0x1   :  { %v551_v0 = vld [vmem:[%s820_s1 + $0x38] sm:$0xff]  ;;  %v550_v1 = vld [vmem:[%s820_s1 + $0x30] sm:$0xff]  ;;  %v549_v2 = vld [vmem:[%s820_s1 + $0x28] sm:$0xff] }
   0x2   :  { %178 = vmatpush.bf16.msra.mxu0 %v551_v0  ;;  %560 = vmatpush.bf16.msra.mxu3 %v551_v0  ;;  %v548_v3 = vld [vmem:[%s820_s1 + $0x20] sm:$0xff]  ;;  %v547_v4 = vld [vmem:[%s820_s1 + $0x18] sm:$0xff]  ;;  %v546_v5 = vld [vmem:[%s820_s1 + $0x10] sm:$0xff] }
   0x3   :  { %v545_v6 = vld [vmem:[%s820_s1 + $0x8] sm:$0xff]  ;;  %v544_v7 = vld [vmem:[%s820_s1] sm:$0xff]  ;;  %v558_v9 = vld [vmem:[%s822_s0 + $0x30] sm:$0xff] }
   0x4   :  { %v552_v8 = vld [vmem:[%s822_s0] sm:$0xff]  ;;  %v553_v10 = vld [vmem:[%s822_s0 + $0x8] sm:$0xff]  ;;  %v559_v11 = vld [vmem:[%s822_s0 + $0x38] sm:$0xff] }
   0x5   :  { %v554_v12 = vld [vmem:[%s822_s0 + $0x10] sm:$0xff]  ;;  %v555_v13 = vld [vmem:[%s822_s0 + $0x18] sm:$0xff]  ;;  %v275_v16 = vld [vmem:[%s821_s2 + $0x68] sm:$0xff] }
   0x6   :  { %179 = vmatpush.bf16.msra.mxu0 %v550_v1  ;;  %561 = vmatpush.bf16.msra.mxu3 %v550_v1  ;;  %v277_v14 = vld [vmem:[%s821_s2 + $0x78] sm:$0xff]  ;;  %v276_v15 = vld [vmem:[%s821_s2 + $0x70] sm:$0xff]  ;;  %v274_v17 = vld [vmem:[%s821_s2 + $0x60] sm:$0xff] }
   0x7   :  { %296 = vmatpush.msra.mxu1 %v277_v14  ;;  %v273_v18 = vld [vmem:[%s821_s2 + $0x58] sm:$0xff]  ;;  %v272_v19 = vld [vmem:[%s821_s2 + $0x50] sm:$0xff]  ;;  %v271_v20 = vld [vmem:[%s821_s2 + $0x48] sm:$0xff] }
   0x8   :  { %v556_v21 = vld [vmem:[%s822_s0 + $0x20] sm:$0xff]  ;;  %v269_v23 = vld [vmem:[%s821_s2 + $0x38] sm:$0xff]  ;;  %v268_v24 = vld [vmem:[%s821_s2 + $0x30] sm:$0xff] }
   0x9   :  { %297 = vmatpush.msra.mxu1 %v276_v15  ;;  %v270_v22 = vld [vmem:[%s821_s2 + $0x40] sm:$0xff]  ;;  %v267_v25 = vld [vmem:[%s821_s2 + $0x28] sm:$0xff]  ;;  %v265_v27 = vld [vmem:[%s821_s2 + $0x18] sm:$0xff] }
   0xa   :  { %180 = vmatpush.bf16.msra.mxu0 %v549_v2  ;;  %562 = vmatpush.bf16.msra.mxu3 %v549_v2  ;;  %v266_v26 = vld [vmem:[%s821_s2 + $0x20] sm:$0xff]  ;;  %v264_v28 = vld [vmem:[%s821_s2 + $0x10] sm:$0xff]  ;;  %v263_v29 = vld [vmem:[%s821_s2 + $0x8] sm:$0xff] }
   0xb   :  { %298 = vmatpush.msra.mxu1 %v275_v16  ;;  %v557_v30 = vld [vmem:[%s822_s0 + $0x28] sm:$0xff]  ;;  %v262_v31 = vld [vmem:[%s821_s2] sm:$0xff]  ;;  %v391_v45 = vld [vmem:[%s821_s2 + $0xf8] sm:$0xff] }
   0xc   :  { %v392_v44 = vld [vmem:[%s821_s2 + $0x100] sm:$0xff]  ;;  %v390_v46 = vld [vmem:[%s821_s2 + $0xf0] sm:$0xff]  ;;  %v389_v47 = vld [vmem:[%s821_s2 + $0xe8] sm:$0xff] }
   0xd   :  { %299 = vmatpush.msra.mxu1 %v274_v17  ;;  %395 = vmatpush.msra.mxu2 %v392_v44  ;;  %v388_v48 = vld [vmem:[%s821_s2 + $0xe0] sm:$0xff]  ;;  %v387_v50 = vld [vmem:[%s821_s2 + $0xd8] sm:$0xff]  ;;  %v386_v51 = vld [vmem:[%s821_s2 + $0xd0] sm:$0xff] }
   0xe   :  { %181 = vmatpush.bf16.msra.mxu0 %v548_v3  ;;  %563 = vmatpush.bf16.msra.mxu3 %v548_v3  ;;  %v385_v52 = vld [vmem:[%s821_s2 + $0xc8] sm:$0xff]  ;;  %v384_v53 = vld [vmem:[%s821_s2 + $0xc0] sm:$0xff]  ;;  %v383_v55 = vld [vmem:[%s821_s2 + $0xb8] sm:$0xff] }
   0xf   :  { %300 = vmatpush.msra.mxu1 %v273_v18  ;;  %396 = vmatpush.msra.mxu2 %v391_v45  ;;  %v382_v56 = vld [vmem:[%s821_s2 + $0xb0] sm:$0xff]  ;;  %v381_v57 = vld [vmem:[%s821_s2 + $0xa8] sm:$0xff]  ;;  %v380_v58 = vld [vmem:[%s821_s2 + $0xa0] sm:$0xff] }
  0x10   :  { %v379_v61 = vld [vmem:[%s821_s2 + $0x98] sm:$0xff]  ;;  %v378_v62 = vld [vmem:[%s821_s2 + $0x90] sm:$0xff]  ;;  %v377_v63 = vld [vmem:[%s821_s2 + $0x88] sm:$0xff] }
  0x11   :  { %301 = vmatpush.msra.mxu1 %v272_v19  ;;  %397 = vmatpush.msra.mxu2 %v390_v46  ;;  %v600_v0 = vld [vmem:[%s821_s2 + $0x80] ss:$0 sm:$0xff] }
  0x12   :  { %182 = vmatpush.bf16.msra.mxu0 %v547_v4  ;;  %564 = vmatpush.bf16.msra.mxu3 %v547_v4 }
  0x13   :  { %302 = vmatpush.msra.mxu1 %v271_v20  ;;  %398 = vmatpush.msra.mxu2 %v389_v47 }
  0x15   :  { %303 = vmatpush.msra.mxu1 %v270_v22  ;;  %399 = vmatpush.msra.mxu2 %v388_v48 }
  0x16   :  { %183 = vmatpush.bf16.msra.mxu0 %v546_v5  ;;  %565 = vmatpush.bf16.msra.mxu3 %v546_v5 }
  0x17   :  { %304 = vmatpush.msra.mxu1 %v269_v23  ;;  %400 = vmatpush.msra.mxu2 %v387_v50 }
  0x19   :  { %305 = vmatpush.msra.mxu1 %v268_v24  ;;  %401 = vmatpush.msra.mxu2 %v386_v51 }
  0x1a   :  { %184 = vmatpush.bf16.msra.mxu0 %v545_v6  ;;  %566 = vmatpush.bf16.msra.mxu3 %v545_v6 }
  0x1b   :  { %306 = vmatpush.msra.mxu1 %v267_v25  ;;  %402 = vmatpush.msra.mxu2 %v385_v52 }
  0x1d   :  { %307 = vmatpush.msra.mxu1 %v266_v26  ;;  %403 = vmatpush.msra.mxu2 %v384_v53 }
  0x1e   :  { %185 = vmatpush.bf16.msra.mxu0 %v544_v7  ;;  %567 = vmatpush.bf16.msra.mxu3 %v544_v7 }
  0x1f   :  { %308 = vmatpush.msra.mxu1 %v265_v27  ;;  %404 = vmatpush.msra.mxu2 %v383_v55 }
  0x21   :  { %186 = vmatmul.bf16.vlgmr.msra.gmra.mxu0 %v552_v8  ;;  %216 = vmatmul.bf16.vlgmr.msra.gmra.mxu3 %v558_v9 }
  0x22   :  { %568 = vmatpush.msrb.mxu3 %v277_v14  ;;  %309 = vmatpush.msra.mxu1 %v264_v28 }
  0x23   :  { %405 = vmatpush.msra.mxu2 %v382_v56 }
  0x24   :  { %569 = vmatpush.msrb.mxu3 %v276_v15  ;;  %310 = vmatpush.msra.mxu1 %v263_v29 }
  0x25   :  { %406 = vmatpush.msra.mxu2 %v381_v57 }
  0x26   :  { %570 = vmatpush.msrb.mxu3 %v275_v16  ;;  %311 = vmatpush.msra.mxu1 %v262_v31 }
  0x27   :  { %407 = vmatpush.msra.mxu2 %v380_v58 }
  0x28   :  { %571 = vmatpush.msrb.mxu3 %v274_v17 }
  0x29   :  { %408 = vmatpush.msra.mxu2 %v379_v61 }
  0x2a   :  { %572 = vmatpush.msrb.mxu3 %v273_v18 }
  0x2b   :  { %409 = vmatpush.msra.mxu2 %v378_v62 }
  0x2c   :  { %573 = vmatpush.msrb.mxu3 %v272_v19 }
  0x2d   :  { %410 = vmatpush.msra.mxu2 %v377_v63 }
  0x2e   :  { %574 = vmatpush.msrb.mxu3 %v271_v20 }
  0x30   :  { %575 = vmatpush.msrb.mxu3 %v270_v22 }
  0x31   :  { %191 = vmatmul.bf16.gmra.mxu0 %v553_v10  ;;  %221 = vmatmul.bf16.gmra.mxu3 %v559_v11 }
  0x32   :  { %576 = vmatpush.msrb.mxu3 %v269_v23 }
  0x34   :  { %577 = vmatpush.msrb.mxu3 %v268_v24 }
  0x36   :  { %578 = vmatpush.msrb.mxu3 %v267_v25 }
  0x38   :  { %579 = vmatpush.msrb.mxu3 %v266_v26 }
  0x3a   :  { %580 = vmatpush.msrb.mxu3 %v265_v27 }
  0x3c   :  { %581 = vmatpush.msrb.mxu3 %v264_v28 }
  0x3e   :  { %582 = vmatpush.msrb.mxu3 %v263_v29 }
  0x40   :  { %583 = vmatpush.msrb.mxu3 %v262_v31 }
  0x41   :  { %196 = vmatmul.bf16.gmra.mxu0 %v554_v12 }
  0x42   :  { %584 = vmatpush.msra.mxu3 %v392_v44 }
  0x44   :  { %585 = vmatpush.msra.mxu3 %v391_v45 }
  0x46   :  { %586 = vmatpush.msra.mxu3 %v390_v46 }
  0x48   :  { %587 = vmatpush.msra.mxu3 %v389_v47 }
  0x4a   :  { %588 = vmatpush.msra.mxu3 %v388_v48 }
  0x4c   :  { %589 = vmatpush.msra.mxu3 %v387_v50 }
  0x4e   :  { %590 = vmatpush.msra.mxu3 %v386_v51 }
  0x50   :  { %591 = vmatpush.msra.mxu3 %v385_v52 }
  0x51   :  { %201 = vmatmul.bf16.gmra.mxu0 %v555_v13 }
  0x52   :  { %592 = vmatpush.msra.mxu3 %v384_v53 }
  0x54   :  { %593 = vmatpush.msra.mxu3 %v383_v55 }
  0x56   :  { %594 = vmatpush.msra.mxu3 %v382_v56 }
  0x58   :  { %595 = vmatpush.msra.mxu3 %v381_v57 }
  0x5a   :  { %596 = vmatpush.msra.mxu3 %v380_v58 }
  0x5c   :  { %597 = vmatpush.msra.mxu3 %v379_v61 }
  0x5e   :  { %598 = vmatpush.msra.mxu3 %v378_v62 }
  0x60   :  { %599 = vmatpush.msra.mxu3 %v377_v63 }
  0x61   :  { %206 = vmatmul.bf16.gmra.mxu0 %v556_v21 }
  0x71   :  { %211 = vmatmul.bf16.gmra.mxu0 %v557_v30 }
  0x9e   :  { %v187_v32 = vpop.f32.mrf.mxu0 }
  0x9f   :  { %312 = vmatmul.f32.vlgmr.msra.gmra.mxu1 %v187_v32 }
  0xa4   :  { %v217_v35 = vpop.f32.mrf.mxu3 }
  0xa5   :  { %348 = vmatmul.f32.vlgmr.msrb.gmra.mxu3 %v217_v35 }
  0xa6   :  { %v189_v33 = vpop.f32.mrf.mxu0 }
  0xa7   :  { %315 = vmatmul.f32.gmra.mxu1 %v189_v33 }
  0xac   :  { %v219_v37 = vpop.f32.mrf.mxu3 }
  0xad   :  { %351 = vmatmul.f32.gmra.mxu3 %v219_v37 }
  0xae   :  { %v192_v34 = vpop.f32.mrf.mxu0 }
  0xaf   :  { %318 = vmatmul.f32.gmra.mxu1 %v192_v34 }
  0xb4   :  { %v222_v39 = vpop.f32.mrf.mxu3 }
  0xb5   :  { %354 = vmatmul.f32.gmra.mxu3 %v222_v39 }
  0xb6   :  { %v194_v36 = vpop.f32.mrf.mxu0 }
  0xb7   :  { %321 = vmatmul.f32.gmra.mxu1 %v194_v36 }
  0xbc   :  { %v224_v41 = vpop.f32.mrf.mxu3 }
  0xbd   :  { %357 = vmatmul.f32.gmra.mxu3 %v224_v41 }
  0xbe   :  { %v197_v38 = vpop.f32.mrf.mxu0 }
  0xbf   :  { %324 = vmatmul.f32.gmra.mxu1 %v197_v38 }
  0xc6   :  { %v199_v40 = vpop.f32.mrf.mxu0 }
  0xc7   :  { %327 = vmatmul.f32.gmra.mxu1 %v199_v40 }
  0xce   :  { %v202_v42 = vpop.f32.mrf.mxu0 }
  0xcf   :  { %330 = vmatmul.f32.gmra.mxu1 %v202_v42 }
  0xd6   :  { %v204_v43 = vpop.f32.mrf.mxu0 }
  0xd7   :  { %333 = vmatmul.f32.gmra.mxu1 %v204_v43 }
  0xde   :  { %v207_v49 = vpop.f32.mrf.mxu0 }
  0xdf   :  { %336 = vmatmul.f32.gmra.mxu1 %v207_v49  ;;  %v601_v49 = vld [vmem:[%s821_s2 + $0x108] ss:$0 sm:$0xff] }
  0xe6   :  { %v209_v54 = vpop.f32.mrf.mxu0 }
  0xe7   :  { %339 = vmatmul.f32.gmra.mxu1 %v209_v54 }
  0xee   :  { %v212_v59 = vpop.f32.mrf.mxu0 }
  0xef   :  { %342 = vmatmul.f32.gmra.mxu1 %v212_v59 }
  0xf6   :  { %v214_v60 = vpop.f32.mrf.mxu0 }
  0xf7   :  { %345 = vmatmul.f32.gmra.mxu1 %v214_v60 }
 0x11c   :  { %v313_v1 = vpop.f32.mrf.mxu1 }
 0x11d   :  { %v314_v2 = vadd.f32 %v600_v0, %v313_v1 }
 0x11f   :  { %v361_v3 = vmax.f32 %v314_v2, 0.0 }
 0x121   :  { %411 = vmatmul.f32.vlgmr.msra.gmra.mxu2 %v361_v3 }
 0x124   :  { %v316_v4 = vpop.f32.mrf.mxu1 }
 0x125   :  { %v317_v5 = vadd.f32 %v600_v0, %v316_v4 }
 0x127   :  { %v362_v6 = vmax.f32 %v317_v5, 0.0 }
 0x128   :  { %v349_v11 = vpop.f32.mrf.mxu3 }
 0x129   :  { %414 = vmatmul.f32.gmra.mxu2 %v362_v6  ;;  %v350_v13 = vadd.f32 %v600_v0, %v349_v11 }
 0x12b   :  { %v373_v15 = vmax.f32 %v350_v13, 0.0 }
 0x12c   :  { %v319_v7 = vpop.f32.mrf.mxu1 }
 0x12d   :  { %v320_v8 = vadd.f32 %v600_v0, %v319_v7  ;;  %447 = vmatmul.f32.vlgmr.msra.gmra.mxu3 %v373_v15 }
 0x12f   :  { %v363_v9 = vmax.f32 %v320_v8, 0.0 }
 0x130   :  { %v352_v17 = vpop.f32.mrf.mxu3 }
 0x131   :  { %417 = vmatmul.f32.gmra.mxu2 %v363_v9  ;;  %v353_v19 = vadd.f32 %v600_v0, %v352_v17 }
 0x133   :  { %v374_v21 = vmax.f32 %v353_v19, 0.0 }
 0x134   :  { %v322_v10 = vpop.f32.mrf.mxu1 }
 0x135   :  { %v323_v12 = vadd.f32 %v600_v0, %v322_v10  ;;  %450 = vmatmul.f32.gmra.mxu3 %v374_v21 }
 0x137   :  { %v364_v14 = vmax.f32 %v323_v12, 0.0 }
 0x138   :  { %v355_v23 = vpop.f32.mrf.mxu3 }
 0x139   :  { %420 = vmatmul.f32.gmra.mxu2 %v364_v14  ;;  %v356_v25 = vadd.f32 %v600_v0, %v355_v23 }
 0x13b   :  { %v375_v27 = vmax.f32 %v356_v25, 0.0 }
 0x13c   :  { %v325_v16 = vpop.f32.mrf.mxu1 }
 0x13d   :  { %v326_v18 = vadd.f32 %v600_v0, %v325_v16  ;;  %453 = vmatmul.f32.gmra.mxu3 %v375_v27 }
 0x13f   :  { %v365_v20 = vmax.f32 %v326_v18, 0.0 }
 0x140   :  { %v358_v29 = vpop.f32.mrf.mxu3 }
 0x141   :  { %423 = vmatmul.f32.gmra.mxu2 %v365_v20  ;;  %v359_v31 = vadd.f32 %v600_v0, %v358_v29 }
 0x143   :  { %v376_v33 = vmax.f32 %v359_v31, 0.0 }
 0x144   :  { %v328_v22 = vpop.f32.mrf.mxu1 }
 0x145   :  { %v329_v24 = vadd.f32 %v600_v0, %v328_v22  ;;  %456 = vmatmul.f32.gmra.mxu3 %v376_v33 }
 0x147   :  { %v366_v26 = vmax.f32 %v329_v24, 0.0 }
 0x149   :  { %426 = vmatmul.f32.gmra.mxu2 %v366_v26 }
 0x14c   :  { %v331_v28 = vpop.f32.mrf.mxu1 }
 0x14d   :  { %v332_v30 = vadd.f32 %v600_v0, %v331_v28 }
 0x14f   :  { %v367_v32 = vmax.f32 %v332_v30, 0.0 }
 0x151   :  { %429 = vmatmul.f32.gmra.mxu2 %v367_v32 }
 0x154   :  { %v334_v34 = vpop.f32.mrf.mxu1 }
 0x155   :  { %v335_v35 = vadd.f32 %v600_v0, %v334_v34 }
 0x157   :  { %v368_v36 = vmax.f32 %v335_v35, 0.0 }
 0x159   :  { %432 = vmatmul.f32.gmra.mxu2 %v368_v36 }
 0x15c   :  { %v337_v37 = vpop.f32.mrf.mxu1 }
 0x15d   :  { %v338_v38 = vadd.f32 %v600_v0, %v337_v37 }
 0x15f   :  { %v369_v39 = vmax.f32 %v338_v38, 0.0 }
 0x161   :  { %435 = vmatmul.f32.gmra.mxu2 %v369_v39 }
 0x164   :  { %v340_v40 = vpop.f32.mrf.mxu1 }
 0x165   :  { %v341_v41 = vadd.f32 %v600_v0, %v340_v40 }
 0x167   :  { %v370_v42 = vmax.f32 %v341_v41, 0.0 }
 0x169   :  { %438 = vmatmul.f32.gmra.mxu2 %v370_v42 }
 0x16c   :  { %v343_v43 = vpop.f32.mrf.mxu1 }
 0x16d   :  { %v344_v44 = vadd.f32 %v600_v0, %v343_v43 }
 0x16f   :  { %v371_v45 = vmax.f32 %v344_v44, 0.0 }
 0x171   :  { %441 = vmatmul.f32.gmra.mxu2 %v371_v45 }
 0x174   :  { %v346_v46 = vpop.f32.mrf.mxu1 }
 0x175   :  { %v347_v47 = vadd.f32 %v600_v0, %v346_v46 }
 0x177   :  { %v372_v48 = vmax.f32 %v347_v47, 0.0 }
 0x179   :  { %444 = vmatmul.f32.gmra.mxu2 %v372_v48 }
 0x1a4   :  { %v412_v50 = vpop.f32.mrf.mxu2 }
 0x1a5   :  { %v413_v51 = vadd.f32 %v601_v49, %v412_v50 }
 0x1a7   :  { %460 = vst [vmem:[%s823_s3] sm:$0xff] %v413_v51 }
 0x1ac   :  { %v415_v52 = vpop.f32.mrf.mxu2 }
 0x1ad   :  { %v416_v53 = vadd.f32 %v601_v49, %v415_v52 }
 0x1af   :  { %461 = vst [vmem:[%s823_s3 + $0x8] sm:$0xff] %v416_v53 }
 0x1b0   :  { %v448_v57 = vpop.f32.mrf.mxu3 }
 0x1b1   :  { %v449_v59 = vadd.f32 %v601_v49, %v448_v57 }
 0x1b3   :  { %472 = vst [vmem:[%s823_s3 + $0x60] sm:$0xff] %v449_v59 }
 0x1b4   :  { %v418_v54 = vpop.f32.mrf.mxu2 }
 0x1b5   :  { %v419_v55 = vadd.f32 %v601_v49, %v418_v54 }
 0x1b7   :  { %462 = vst [vmem:[%s823_s3 + $0x10] sm:$0xff] %v419_v55 }
 0x1b8   :  { %v451_v61 = vpop.f32.mrf.mxu3 }
 0x1b9   :  { %v452_v63 = vadd.f32 %v601_v49, %v451_v61 }
 0x1bb   :  { %473 = vst [vmem:[%s823_s3 + $0x68] sm:$0xff] %v452_v63 }
 0x1bc   :  { %v421_v56 = vpop.f32.mrf.mxu2 }
 0x1bd   :  { %v422_v58 = vadd.f32 %v601_v49, %v421_v56 }
 0x1bf   :  { %463 = vst [vmem:[%s823_s3 + $0x18] sm:$0xff] %v422_v58 }
 0x1c0   :  { %v454_v1 = vpop.f32.mrf.mxu3 }
 0x1c1   :  { %v455_v3 = vadd.f32 %v601_v49, %v454_v1 }
 0x1c3   :  { %474 = vst [vmem:[%s823_s3 + $0x70] sm:$0xff] %v455_v3 }
 0x1c4   :  { %v424_v60 = vpop.f32.mrf.mxu2 }
 0x1c5   :  { %v425_v62 = vadd.f32 %v601_v49, %v424_v60 }
 0x1c7   :  { %464 = vst [vmem:[%s823_s3 + $0x20] sm:$0xff] %v425_v62 }
 0x1c8   :  { %v457_v5 = vpop.f32.mrf.mxu3 }
 0x1c9   :  { %v458_v7 = vadd.f32 %v601_v49, %v457_v5 }
 0x1cb   :  { %475 = vst [vmem:[%s823_s3 + $0x78] sm:$0xff] %v458_v7 }
 0x1cc   :  { %v427_v0 = vpop.f32.mrf.mxu2 }
 0x1cd   :  { %v428_v2 = vadd.f32 %v601_v49, %v427_v0 }
 0x1cf   :  { %465 = vst [vmem:[%s823_s3 + $0x28] sm:$0xff] %v428_v2 }
 0x1d4   :  { %v430_v4 = vpop.f32.mrf.mxu2 }
 0x1d5   :  { %v431_v6 = vadd.f32 %v601_v49, %v430_v4 }
 0x1d7   :  { %466 = vst [vmem:[%s823_s3 + $0x30] sm:$0xff] %v431_v6 }
 0x1dc   :  { %v433_v8 = vpop.f32.mrf.mxu2 }
 0x1dd   :  { %v434_v9 = vadd.f32 %v601_v49, %v433_v8 }
 0x1df   :  { %467 = vst [vmem:[%s823_s3 + $0x38] sm:$0xff] %v434_v9 }
 0x1e4   :  { %v436_v10 = vpop.f32.mrf.mxu2 }
 0x1e5   :  { %v437_v11 = vadd.f32 %v601_v49, %v436_v10 }
 0x1e7   :  { %468 = vst [vmem:[%s823_s3 + $0x40] sm:$0xff] %v437_v11 }
 0x1ec   :  { %v439_v12 = vpop.f32.mrf.mxu2 }
 0x1ed   :  { %v440_v13 = vadd.f32 %v601_v49, %v439_v12 }
 0x1ef   :  { %469 = vst [vmem:[%s823_s3 + $0x48] sm:$0xff] %v440_v13 }
 0x1f4   :  { %v442_v14 = vpop.f32.mrf.mxu2 }
 0x1f5   :  { %v443_v15 = vadd.f32 %v601_v49, %v442_v14 }
 0x1f7   :  { %470 = vst [vmem:[%s823_s3 + $0x50] sm:$0xff] %v443_v15 }
 0x1fc   :  { %v445_v16 = vpop.f32.mrf.mxu2 }
 0x1fd   :  { %v446_v17 = vadd.f32 %v601_v49, %v445_v16 }
 0x1ff   :  { %471 = vst [vmem:[%s823_s3 + $0x58] sm:$0xff] %v446_v17 }

</bundles_post_ra>
